<compile_context>
chip_gen: v5e
topology: v5e:2x2
jax: 0.10.0
libtpu: 0.0.40
codegen_flags: <defaults>
</compile_context>

<pallas_src>
import functools

import jax
import jax.numpy as jnp
from jax.experimental import pallas as pl
from jax.experimental.pallas import tpu as pltpu

KSIZE = 3  # kernel_size=3 branch of the module (padding=1)


def _spatial_attention_kernel(w_ref, x_ref, o_ref, *, H, W):
    # w_ref: SMEM (2*KSIZE*KSIZE,) f32 -- Conv2d(2,1,3) weight, flattened [in_ch, kh, kw]
    # x_ref: VMEM (Bt, C, H*W) f32     -- Bt batch elements, spatial flattened on lanes
    # o_ref: VMEM (Bt, C, H*W) f32
    x = x_ref[...]                      # single logical load; reused for reduce + gate mul
    Bt, C, HW = x.shape

    # Channel-wise reductions (torch.mean / torch.max over dim=1); C is the
    # sublane axis -> XLU reductions, lanes stay fully dense.
    avg = jnp.mean(x, axis=1)           # (Bt, HW)
    mx = jnp.max(x, axis=1)             # (Bt, HW)

    # Flattened row/col masks implementing the conv's zero padding.
    idx = jax.lax.broadcasted_iota(jnp.int32, (Bt, HW), 1)
    col = idx % W
    row_ok = {-1: idx >= W, 0: None, 1: idx < (H - 1) * W}
    col_ok = {-1: col >= 1, 0: None, 1: col < (W - 1)}

    # Center tap (dh=0, dw=0): no shift, no mask.
    c_idx = 1 * KSIZE + 1
    scale = w_ref[c_idx] * avg + w_ref[KSIZE * KSIZE + c_idx] * mx

    # Remaining 8 taps: lane rotations (XLU) + edge masks, scalar*vector FMAs.
    for dh in (-1, 0, 1):
        for dw in (-1, 0, 1):
            if dh == 0 and dw == 0:
                continue
            s = dh * W + dw                         # flattened neighbour offset
            sh = (-s) % HW                          # roll so rolled[p] = map[p + s]
            a = pltpu.roll(avg, shift=sh, axis=1)
            m = pltpu.roll(mx, shift=sh, axis=1)
            wi = (dh + 1) * KSIZE + (dw + 1)
            tap = w_ref[wi] * a + w_ref[KSIZE * KSIZE + wi] * m
            ok = row_ok[dh]
            if col_ok[dw] is not None:
                ok = col_ok[dw] if ok is None else (ok & col_ok[dw])
            if ok is not None:
                tap = jnp.where(ok, tap, 0.0)       # zero-padding of the scale map
            scale = scale + tap

    gate = jax.nn.sigmoid(scale)                    # (Bt, HW)
    o_ref[...] = x * gate[:, None, :]               # broadcast over channels (sublanes)


def _pick_block_b(B, C, HW, itemsize=4, max_block_bytes=4 << 20):
    """Largest divisor of B whose (Bt, C, HW) block stays under the VMEM budget."""
    per_b = C * HW * itemsize
    bb = max(1, min(B, max_block_bytes // max(per_b, 1)))
    while B % bb:
        bb -= 1
    return bb


def spatial_attention(x, weight):
    """x: (B, C, H, W); weight: (1, 2, KSIZE, KSIZE) Conv2d OIHW weight, no bias."""
    B, C, H, W = x.shape
    HW = H * W
    x = x.astype(jnp.float32)
    x2 = x.reshape(B, C, HW)                        # lane-dense last dim (free reshape)
    wflat = weight.reshape(-1).astype(jnp.float32)  # (2*KSIZE*KSIZE,)

    bb = _pick_block_b(B, C, HW)
    grid = (B // bb,)
    kernel = functools.partial(_spatial_attention_kernel, H=H, W=W)

    out = pl.pallas_call(
        kernel,
        out_shape=jax.ShapeDtypeStruct((B, C, HW), jnp.float32),
        grid=grid,
        in_specs=[
            pl.BlockSpec(memory_space=pltpu.MemorySpace.SMEM),   # conv weights (scalars)
            pl.BlockSpec((bb, C, HW), lambda b: (b, 0, 0)),      # x block
        ],
        out_specs=pl.BlockSpec((bb, C, HW), lambda b: (b, 0, 0)),
        compiler_params=pltpu.CompilerParams(
            dimension_semantics=("parallel",)),
    )(wflat, x2)
    return out.reshape(B, C, H, W)


def _reference(x, weight):
    avg = jnp.mean(x, axis=1, keepdims=True)
    mx = jnp.max(x, axis=1, keepdims=True)
    scale = jnp.concatenate([avg, mx], axis=1)
    conv = jax.lax.conv_general_dilated(
        scale, weight, window_strides=(1, 1), padding="SAME",
        dimension_numbers=("NCHW", "OIHW", "NCHW"))
    return x * jax.nn.sigmoid(conv)


if __name__ == "__main__":
    B, C, H, W = 2, 4, 16, 16

    key = jax.random.PRNGKey(0)
    kx, kw = jax.random.split(key)
    x = jax.random.normal(kx, (B, C, H, W), dtype=jnp.float32)
    # Deterministic Conv2d(2, 1, 3, bias=False) weight, shape (out=1, in=2, 3, 3)
    weight = 0.1 * jax.random.normal(kw, (1, 2, KSIZE, KSIZE), dtype=jnp.float32)

    out = spatial_attention(x, weight)
    out = jax.block_until_ready(out)

    ref = _reference(x, weight)
    assert out.shape == (B, C, H, W)
    assert jnp.allclose(out, ref, atol=1e-5, rtol=1e-5), "mismatch vs reference"

    print("KERNEL_OK")
</pallas_src>

<mosaic_0001>
module attributes {stable_mosaic.version = 11 : i64} {
  func.func @_spatial_attention_kernel(%arg0: i32, %arg1: memref<18xf32, #tpu.memory_space<smem>>, %arg2: memref<2x4x256xf32, #tpu.memory_space<vmem>>, %arg3: memref<2x4x256xf32, #tpu.memory_space<vmem>>) attributes {dimension_semantics = [#tpu.dimension_semantics<parallel>], iteration_bounds = array<i64: 1>, scalar_prefetch = 0 : i64, scratch_operands = 0 : i64, tpu.core_type = #tpu.core_type<tc>, window_params = [{transform_indices = @transform_0, window_bounds = array<i64: 18>}, {transform_indices = @transform_1, window_bounds = array<i64: 2, 4, 256>}, {transform_indices = @transform_2, window_bounds = array<i64: 2, 4, 256>}]} {
    %c0 = arith.constant 0 : index
    %c0_0 = arith.constant 0 : index
    %c0_1 = arith.constant 0 : index
    %0 = vector.load %arg2[%c0, %c0_0, %c0_1] : memref<2x4x256xf32, #tpu.memory_space<vmem>>, vector<2x4x256xf32>
    %cst = arith.constant dense<0.000000e+00> : vector<2x256xf32>
    %1 = vector.multi_reduction <add>, %0, %cst [1] : vector<2x4x256xf32> to vector<2x256xf32>
    %cst_2 = arith.constant 4.000000e+00 : f32
    %2 = vector.broadcast %cst_2 : f32 to vector<2x256xf32>
    %3 = arith.divf %1, %2 : vector<2x256xf32>
    %cst_3 = arith.constant dense<0xFF800000> : vector<2x256xf32>
    %4 = vector.multi_reduction <maximumf>, %0, %cst_3 [1] : vector<2x4x256xf32> to vector<2x256xf32>
    %5 = tpu.iota {dimensions = array<i32: 1>} : vector<2x256xi32>
    %c16_i32 = arith.constant 16 : i32
    %c0_i32 = arith.constant 0 : i32
    %6 = arith.cmpi eq, %c16_i32, %c0_i32 : i32
    %c1_i32 = arith.constant 1 : i32
    %7 = arith.select %6, %c1_i32, %c16_i32 : i32
    %8 = vector.broadcast %7 : i32 to vector<2x256xi32>
    %9 = arith.remsi %5, %8 : vector<2x256xi32>
    %c0_i32_4 = arith.constant 0 : i32
    %10 = vector.broadcast %c0_i32_4 : i32 to vector<2x256xi32>
    %11 = arith.cmpi ne, %9, %10 : vector<2x256xi32>
    %c0_i32_5 = arith.constant 0 : i32
    %12 = vector.broadcast %c0_i32_5 : i32 to vector<2x256xi32>
    %13 = arith.cmpi slt, %9, %12 : vector<2x256xi32>
    %c0_i32_6 = arith.constant 0 : i32
    %14 = arith.cmpi slt, %7, %c0_i32_6 : i32
    %15 = vector.broadcast %14 : i1 to vector<2x256xi1>
    %16 = vector.broadcast %15 : vector<2x256xi1> to vector<2x256xi1>
    %17 = arith.xori %13, %16 : vector<2x256xi1>
    %18 = arith.andi %17, %11 : vector<2x256xi1>
    %19 = vector.broadcast %7 : i32 to vector<2x256xi32>
    %20 = arith.addi %9, %19 : vector<2x256xi32>
    %21 = arith.select %18, %20, %9 : vector<2x256xi1>, vector<2x256xi32>
    %c16_i32_7 = arith.constant 16 : i32
    %22 = vector.broadcast %c16_i32_7 : i32 to vector<2x256xi32>
    %23 = arith.cmpi sge, %5, %22 : vector<2x256xi32>
    %c240_i32 = arith.constant 240 : i32
    %24 = vector.broadcast %c240_i32 : i32 to vector<2x256xi32>
    %25 = arith.cmpi slt, %5, %24 : vector<2x256xi32>
    %c1_i32_8 = arith.constant 1 : i32
    %26 = vector.broadcast %c1_i32_8 : i32 to vector<2x256xi32>
    %27 = arith.cmpi sge, %21, %26 : vector<2x256xi32>
    %c15_i32 = arith.constant 15 : i32
    %28 = vector.broadcast %c15_i32 : i32 to vector<2x256xi32>
    %29 = arith.cmpi slt, %21, %28 : vector<2x256xi32>
    %c4 = arith.constant 4 : index
    %30 = memref.load %arg1[%c4] : memref<18xf32, #tpu.memory_space<smem>>
    %31 = vector.broadcast %30 : f32 to vector<2x256xf32>
    %32 = arith.mulf %31, %3 : vector<2x256xf32>
    %c13 = arith.constant 13 : index
    %33 = memref.load %arg1[%c13] : memref<18xf32, #tpu.memory_space<smem>>
    %34 = vector.broadcast %33 : f32 to vector<2x256xf32>
    %35 = arith.mulf %34, %4 : vector<2x256xf32>
    %36 = arith.addf %32, %35 : vector<2x256xf32>
    %c17_i32 = arith.constant 17 : i32
    %37 = tpu.dynamic_rotate %3 by %c17_i32 dim 1 : vector<2x256xf32>, i32 -> vector<2x256xf32>
    %c17_i32_9 = arith.constant 17 : i32
    %38 = tpu.dynamic_rotate %4 by %c17_i32_9 dim 1 : vector<2x256xf32>, i32 -> vector<2x256xf32>
    %c0_10 = arith.constant 0 : index
    %39 = memref.load %arg1[%c0_10] : memref<18xf32, #tpu.memory_space<smem>>
    %40 = vector.broadcast %39 : f32 to vector<2x256xf32>
    %41 = arith.mulf %40, %37 : vector<2x256xf32>
    %c9 = arith.constant 9 : index
    %42 = memref.load %arg1[%c9] : memref<18xf32, #tpu.memory_space<smem>>
    %43 = vector.broadcast %42 : f32 to vector<2x256xf32>
    %44 = arith.mulf %43, %38 : vector<2x256xf32>
    %45 = arith.addf %41, %44 : vector<2x256xf32>
    %46 = arith.andi %23, %27 : vector<2x256xi1>
    %cst_11 = arith.constant 0.000000e+00 : f32
    %47 = vector.broadcast %cst_11 : f32 to vector<2x256xf32>
    %48 = arith.select %46, %45, %47 : vector<2x256xi1>, vector<2x256xf32>
    %49 = arith.addf %36, %48 : vector<2x256xf32>
    %c16_i32_12 = arith.constant 16 : i32
    %50 = tpu.dynamic_rotate %3 by %c16_i32_12 dim 1 : vector<2x256xf32>, i32 -> vector<2x256xf32>
    %c16_i32_13 = arith.constant 16 : i32
    %51 = tpu.dynamic_rotate %4 by %c16_i32_13 dim 1 : vector<2x256xf32>, i32 -> vector<2x256xf32>
    %c1 = arith.constant 1 : index
    %52 = memref.load %arg1[%c1] : memref<18xf32, #tpu.memory_space<smem>>
    %53 = vector.broadcast %52 : f32 to vector<2x256xf32>
    %54 = arith.mulf %53, %50 : vector<2x256xf32>
    %c10 = arith.constant 10 : index
    %55 = memref.load %arg1[%c10] : memref<18xf32, #tpu.memory_space<smem>>
    %56 = vector.broadcast %55 : f32 to vector<2x256xf32>
    %57 = arith.mulf %56, %51 : vector<2x256xf32>
    %58 = arith.addf %54, %57 : vector<2x256xf32>
    %cst_14 = arith.constant 0.000000e+00 : f32
    %59 = vector.broadcast %cst_14 : f32 to vector<2x256xf32>
    %60 = arith.select %23, %58, %59 : vector<2x256xi1>, vector<2x256xf32>
    %61 = arith.addf %49, %60 : vector<2x256xf32>
    %c15_i32_15 = arith.constant 15 : i32
    %62 = tpu.dynamic_rotate %3 by %c15_i32_15 dim 1 : vector<2x256xf32>, i32 -> vector<2x256xf32>
    %c15_i32_16 = arith.constant 15 : i32
    %63 = tpu.dynamic_rotate %4 by %c15_i32_16 dim 1 : vector<2x256xf32>, i32 -> vector<2x256xf32>
    %c2 = arith.constant 2 : index
    %64 = memref.load %arg1[%c2] : memref<18xf32, #tpu.memory_space<smem>>
    %65 = vector.broadcast %64 : f32 to vector<2x256xf32>
    %66 = arith.mulf %65, %62 : vector<2x256xf32>
    %c11 = arith.constant 11 : index
    %67 = memref.load %arg1[%c11] : memref<18xf32, #tpu.memory_space<smem>>
    %68 = vector.broadcast %67 : f32 to vector<2x256xf32>
    %69 = arith.mulf %68, %63 : vector<2x256xf32>
    %70 = arith.addf %66, %69 : vector<2x256xf32>
    %71 = arith.andi %23, %29 : vector<2x256xi1>
    %cst_17 = arith.constant 0.000000e+00 : f32
    %72 = vector.broadcast %cst_17 : f32 to vector<2x256xf32>
    %73 = arith.select %71, %70, %72 : vector<2x256xi1>, vector<2x256xf32>
    %74 = arith.addf %61, %73 : vector<2x256xf32>
    %c1_i32_18 = arith.constant 1 : i32
    %75 = tpu.dynamic_rotate %3 by %c1_i32_18 dim 1 : vector<2x256xf32>, i32 -> vector<2x256xf32>
    %c1_i32_19 = arith.constant 1 : i32
    %76 = tpu.dynamic_rotate %4 by %c1_i32_19 dim 1 : vector<2x256xf32>, i32 -> vector<2x256xf32>
    %c3 = arith.constant 3 : index
    %77 = memref.load %arg1[%c3] : memref<18xf32, #tpu.memory_space<smem>>
    %78 = vector.broadcast %77 : f32 to vector<2x256xf32>
    %79 = arith.mulf %78, %75 : vector<2x256xf32>
    %c12 = arith.constant 12 : index
    %80 = memref.load %arg1[%c12] : memref<18xf32, #tpu.memory_space<smem>>
    %81 = vector.broadcast %80 : f32 to vector<2x256xf32>
    %82 = arith.mulf %81, %76 : vector<2x256xf32>
    %83 = arith.addf %79, %82 : vector<2x256xf32>
    %cst_20 = arith.constant 0.000000e+00 : f32
    %84 = vector.broadcast %cst_20 : f32 to vector<2x256xf32>
    %85 = arith.select %27, %83, %84 : vector<2x256xi1>, vector<2x256xf32>
    %86 = arith.addf %74, %85 : vector<2x256xf32>
    %c255_i32 = arith.constant 255 : i32
    %87 = tpu.dynamic_rotate %3 by %c255_i32 dim 1 : vector<2x256xf32>, i32 -> vector<2x256xf32>
    %c255_i32_21 = arith.constant 255 : i32
    %88 = tpu.dynamic_rotate %4 by %c255_i32_21 dim 1 : vector<2x256xf32>, i32 -> vector<2x256xf32>
    %c5 = arith.constant 5 : index
    %89 = memref.load %arg1[%c5] : memref<18xf32, #tpu.memory_space<smem>>
    %90 = vector.broadcast %89 : f32 to vector<2x256xf32>
    %91 = arith.mulf %90, %87 : vector<2x256xf32>
    %c14 = arith.constant 14 : index
    %92 = memref.load %arg1[%c14] : memref<18xf32, #tpu.memory_space<smem>>
    %93 = vector.broadcast %92 : f32 to vector<2x256xf32>
    %94 = arith.mulf %93, %88 : vector<2x256xf32>
    %95 = arith.addf %91, %94 : vector<2x256xf32>
    %cst_22 = arith.constant 0.000000e+00 : f32
    %96 = vector.broadcast %cst_22 : f32 to vector<2x256xf32>
    %97 = arith.select %29, %95, %96 : vector<2x256xi1>, vector<2x256xf32>
    %98 = arith.addf %86, %97 : vector<2x256xf32>
    %c241_i32 = arith.constant 241 : i32
    %99 = tpu.dynamic_rotate %3 by %c241_i32 dim 1 : vector<2x256xf32>, i32 -> vector<2x256xf32>
    %c241_i32_23 = arith.constant 241 : i32
    %100 = tpu.dynamic_rotate %4 by %c241_i32_23 dim 1 : vector<2x256xf32>, i32 -> vector<2x256xf32>
    %c6 = arith.constant 6 : index
    %101 = memref.load %arg1[%c6] : memref<18xf32, #tpu.memory_space<smem>>
    %102 = vector.broadcast %101 : f32 to vector<2x256xf32>
    %103 = arith.mulf %102, %99 : vector<2x256xf32>
    %c15 = arith.constant 15 : index
    %104 = memref.load %arg1[%c15] : memref<18xf32, #tpu.memory_space<smem>>
    %105 = vector.broadcast %104 : f32 to vector<2x256xf32>
    %106 = arith.mulf %105, %100 : vector<2x256xf32>
    %107 = arith.addf %103, %106 : vector<2x256xf32>
    %108 = arith.andi %25, %27 : vector<2x256xi1>
    %cst_24 = arith.constant 0.000000e+00 : f32
    %109 = vector.broadcast %cst_24 : f32 to vector<2x256xf32>
    %110 = arith.select %108, %107, %109 : vector<2x256xi1>, vector<2x256xf32>
    %111 = arith.addf %98, %110 : vector<2x256xf32>
    %c240_i32_25 = arith.constant 240 : i32
    %112 = tpu.dynamic_rotate %3 by %c240_i32_25 dim 1 : vector<2x256xf32>, i32 -> vector<2x256xf32>
    %c240_i32_26 = arith.constant 240 : i32
    %113 = tpu.dynamic_rotate %4 by %c240_i32_26 dim 1 : vector<2x256xf32>, i32 -> vector<2x256xf32>
    %c7 = arith.constant 7 : index
    %114 = memref.load %arg1[%c7] : memref<18xf32, #tpu.memory_space<smem>>
    %115 = vector.broadcast %114 : f32 to vector<2x256xf32>
    %116 = arith.mulf %115, %112 : vector<2x256xf32>
    %c16 = arith.constant 16 : index
    %117 = memref.load %arg1[%c16] : memref<18xf32, #tpu.memory_space<smem>>
    %118 = vector.broadcast %117 : f32 to vector<2x256xf32>
    %119 = arith.mulf %118, %113 : vector<2x256xf32>
    %120 = arith.addf %116, %119 : vector<2x256xf32>
    %cst_27 = arith.constant 0.000000e+00 : f32
    %121 = vector.broadcast %cst_27 : f32 to vector<2x256xf32>
    %122 = arith.select %25, %120, %121 : vector<2x256xi1>, vector<2x256xf32>
    %123 = arith.addf %111, %122 : vector<2x256xf32>
    %c239_i32 = arith.constant 239 : i32
    %124 = tpu.dynamic_rotate %3 by %c239_i32 dim 1 : vector<2x256xf32>, i32 -> vector<2x256xf32>
    %c239_i32_28 = arith.constant 239 : i32
    %125 = tpu.dynamic_rotate %4 by %c239_i32_28 dim 1 : vector<2x256xf32>, i32 -> vector<2x256xf32>
    %c8 = arith.constant 8 : index
    %126 = memref.load %arg1[%c8] : memref<18xf32, #tpu.memory_space<smem>>
    %127 = vector.broadcast %126 : f32 to vector<2x256xf32>
    %128 = arith.mulf %127, %124 : vector<2x256xf32>
    %c17 = arith.constant 17 : index
    %129 = memref.load %arg1[%c17] : memref<18xf32, #tpu.memory_space<smem>>
    %130 = vector.broadcast %129 : f32 to vector<2x256xf32>
    %131 = arith.mulf %130, %125 : vector<2x256xf32>
    %132 = arith.addf %128, %131 : vector<2x256xf32>
    %133 = arith.andi %25, %29 : vector<2x256xi1>
    %cst_29 = arith.constant 0.000000e+00 : f32
    %134 = vector.broadcast %cst_29 : f32 to vector<2x256xf32>
    %135 = arith.select %133, %132, %134 : vector<2x256xi1>, vector<2x256xf32>
    %136 = arith.addf %123, %135 : vector<2x256xf32>
    %137 = arith.negf %136 : vector<2x256xf32>
    %138 = math.exp %137 : vector<2x256xf32>
    %cst_30 = arith.constant 1.000000e+00 : f32
    %139 = vector.broadcast %cst_30 : f32 to vector<2x256xf32>
    %140 = arith.addf %139, %138 : vector<2x256xf32>
    %141 = arith.divf %139, %140 : vector<2x256xf32>
    %142 = vector.shape_cast %141 : vector<2x256xf32> to vector<2x1x256xf32>
    %143 = vector.broadcast %142 : vector<2x1x256xf32> to vector<2x4x256xf32>
    %144 = arith.mulf %0, %143 : vector<2x4x256xf32>
    %c0_31 = arith.constant 0 : index
    %c0_32 = arith.constant 0 : index
    %c0_33 = arith.constant 0 : index
    %145 = vector.load %arg3[%c0_31, %c0_32, %c0_33] : memref<2x4x256xf32, #tpu.memory_space<vmem>>, vector<2x4x256xf32>
    tpu.vector_store %arg3[%c0_31, %c0_32, %c0_33], %144 {strides = array<i32>} : memref<2x4x256xf32, #tpu.memory_space<vmem>>, vector<2x4x256xf32>,
    return
  }
  func.func @transform_0(%arg0: i32) -> i32 {
    %c0_i32 = arith.constant 0 : i32
    %c0_i32_0 = arith.constant 0 : i32
    return %c0_i32 : i32
  }
  func.func @transform_1(%arg0: i32) -> (i32, i32, i32) {
    %c0_i32 = arith.constant 0 : i32
    %c0_i32_0 = arith.constant 0 : i32
    %c0_i32_1 = arith.constant 0 : i32
    return %arg0, %c0_i32, %c0_i32_0 : i32, i32, i32
  }
  func.func @transform_2(%arg0: i32) -> (i32, i32, i32) {
    %c0_i32 = arith.constant 0 : i32
    %c0_i32_0 = arith.constant 0 : i32
    %c0_i32_1 = arith.constant 0 : i32
    return %arg0, %c0_i32, %c0_i32_0 : i32, i32, i32
  }
}

</mosaic_0001>

<bundles_post_ra>
// kernel: tpu_custom_call.1
= control target key start
LH: loop header
LB: loop body
LE: loop exit
PB: predicated region body
PF: predicated region fallthrough
CT: control target
= control target key end

     0   :  { %7 = vsyncpa [#allocation5], 0  ;;  %s1099_s0 = inlined_call_operand.hbm [shape: f32[18], index: 0, kind: input, shape index: {}]   ;;  %s1100_s1 = inlined_call_operand.hbm [shape: f32[2,4,256], index: 1, kind: input, shape index: {}]   ;;  %s1101_s2 = inlined_call_operand.hbm [shape: f32[2,4,256], index: 2, kind: output, shape index: {}]  }
   0x1   :  { %8 = vsyncpa [#allocation3], 0 }
   0x2   :  { %9 = vsyncpa [#allocation4], 0  ;;  %s15_s11 = sshll.u32 %s1099_s0, 4  ;;  %s23_s14 = sshll.u32 %s1100_s1, 4  ;;  %s16_s11 = int_to_ptr.hbm [resolvable:$true] %s15_s11  ;;  %s24_s14 = int_to_ptr.hbm [resolvable:$true] %s23_s14 }
   0x3   :  { %s740_s15 = smov [#allocation2]   ;;  %s741_s16 = smov [#allocation6]  }
   0x4   :  { %18 = dma.hbm_to_smem %s16_s11, 16, %s740_s15, [#allocation5]  }
   0x5   :  { %s25_s17 = sshll.u32 %s741_s16, 4  ;;  %s742_s18 = smov 128   ;;  %s26_s17 = int_to_ptr.vmem [resolvable:$true] %s25_s17 }
   0x6   :  { %s743_s19 = smov 8  }
   0x7   :  { %31 = dma.hbm_to_vmem [thread:$0]  %s24_s14, 256, %s26_s17, [#allocation3], %s742_s18, %s742_s18, %s743_s19  }
   0x8   :  { %734 = dma.done.wait [#allocation5], 16  }
   0x9   :  { %735 = vsyncadd [#allocation5], 4294967280 }
   0xa   :  { %736 = dma.done.wait [#allocation3], 256  }
   0xb   :  { %737 = vsyncadd [#allocation3], 4294967040 }
   0xc   :  { %40 = sfence }
   0xd   :  { %v778_v0 = vld [vmem:[#allocation6] sm:$0xff]  ;;  %v780_v1 = vld [vmem:[#allocation6 + $0x8] sm:$0xff]  ;;  %v744_v2 = vmov 4.0   ;;  %vm56_vm0 = vcmask 1043456   ;;  %vm190_vm2 = vcmask 1041409   ;;  %s745_s0 = smov 17  }
   0xe   :  { %45 = vst [vmem:[#allocation1] ss:$2 sm:$0xff] %v778_v0  ;;  %656 = vrcp.f32 %v744_v2  ;;  %s746_s1 = smov 16   ;;  %s747_s20 = smov 15  }
   0xf   :  { %49 = vst [vmem:[#allocation1 + $0x10] ss:$2 sm:$0xff] %v780_v1  ;;  %s748_s21 = smov 1   ;;  %s749_s22 = smov 127  }
  0x10   :  { %s750_s23 = smov 113   ;;  %s751_s24 = smov 112  }
  0x11   :  { %s752_s25 = smov 111   ;;  %s216_s26 = sld [smem:[#allocation2]] }
  0x12   :  { %s623_s27 = sld [smem:[#allocation2 + $0x9]]  ;;  %s753_s16 = smov [#allocation7]  }
  0x13   :  { %s621_s28 = sld [smem:[#allocation2 + $0x4]]  ;;  %s605_s17 = sshll.u32 %s753_s16, 4  ;;  %s606_s17 = int_to_ptr.vmem [resolvable:$true] %s605_s17 }
  0x14   :  { %v657_v3 = vpop.eup %656  ;;  %s622_s29 = sld [smem:[#allocation2 + $0xd]] }
  0x15   :  { %v46_v4 = vld.sshfl [vmem:[#allocation1] sm:$0xff pattern:$0x75316420]  ;;  %v47_v5 = vld.sshfl [vmem:[#allocation1 + $0x8] sm:$0xff pattern:$0x75316420]  ;;  %vm90_vm1 = vweird.f32 %v657_v3 }
  0x16   :  { %v50_v6 = vld.sshfl [vmem:[#allocation1 + $0x10] sm:$0xff pattern:$0x75316420]  ;;  %v51_v7 = vld.sshfl [vmem:[#allocation1 + $0x18] sm:$0xff pattern:$0x75316420] }
  0x17   :  { %v57_v8 = vsel %vm56_vm0, %v46_v4, 0.0  ;;  %v71_v9 = vsel %vm56_vm0, %v50_v6, 0.0  ;;  %v86_v10 = vmul.f32 4.0, %v657_v3  ;;  %96 = vst [vmem:[#allocation1] ss:$2 sm:$0xff] %v778_v0  ;;  %v64_v11 = vsel %vm56_vm0, %v47_v5, 0.0 }
  0x18   :  { %v58_v12 = vrot.slane %v57_v8, 4  ;;  %v72_v13 = vrot.slane %v71_v9, 4  ;;  %100 = vst [vmem:[#allocation1 + $0x10] ss:$2 sm:$0xff] %v780_v1  ;;  %v65_v14 = vrot.slane %v64_v11, 4  ;;  %v78_v15 = vsel %vm56_vm0, %v51_v7, 0.0 }
  0x19   :  { %v87_v16 = vsub.f32 1.0, %v86_v10  ;;  %v79_v17 = vrot.slane %v78_v15, 4  ;;  %s843_s30 = sld [smem:[#allocation2 + $0xa]] }
  0x1a   :  { %v59_v18 = vadd.f32 %v58_v12, %v57_v8  ;;  %v73_v19 = vadd.f32 %v72_v13, %v71_v9  ;;  %v66_v20 = vadd.f32 %v65_v14, %v64_v11  ;;  %s845_s3 = sld [smem:[#allocation2 + $0x1]] }
  0x1b   :  { %v88_v21 = vmul.f32 %v657_v3, %v87_v16  ;;  %v80_v22 = vadd.f32 %v79_v17, %v78_v15  ;;  %s856_s4 = sld [smem:[#allocation2 + $0xb]] }
  0x1c   :  { %v60_v23 = vrot.slane %v59_v18, 2  ;;  %v74_v24 = vrot.slane %v73_v19, 2  ;;  %v67_v25 = vrot.slane %v66_v20, 2  ;;  %s867_s5 = sld [smem:[#allocation2 + $0x2]] }
  0x1d   :  { %v89_v26 = vadd.f32 %v657_v3, %v88_v21  ;;  %v81_v27 = vrot.slane %v80_v22, 2  ;;  %v135_v21 = vlaneseq  ;;  %s884_s6 = sld [smem:[#allocation2 + $0x3]] }
  0x1e   :  { %v61_v28 = vadd.f32 %v60_v23, %v59_v18  ;;  %v75_v29 = vadd.f32 %v74_v24, %v73_v19  ;;  %v97_v30 = vld.sshfl [vmem:[#allocation1] sm:$0xff pattern:$0x75316420]  ;;  %v68_v31 = vadd.f32 %v67_v25, %v66_v20  ;;  %v98_v32 = vld.sshfl [vmem:[#allocation1 + $0x8] sm:$0xff pattern:$0x75316420] }
  0x1f   :  { %v101_v33 = vld.sshfl [vmem:[#allocation1 + $0x10] sm:$0xff pattern:$0x75316420]  ;;  %v107_v34 = vsel %vm56_vm0, %v97_v30, -inf  ;;  %v82_v35 = vadd.f32 %v81_v27, %v80_v22  ;;  %v114_v36 = vsel %vm56_vm0, %v98_v32, -inf  ;;  %v91_v41 = vsel %vm90_vm1, %v657_v3, %v89_v26  ;;  %s900_s7 = sld [smem:[#allocation2 + $0xc]] }
  0x20   :  { %v62_v37 = vrot.slane %v61_v28, 1  ;;  %v76_v38 = vrot.slane %v75_v29, 1  ;;  %v108_v39 = vrot.slane %v107_v34, 4  ;;  %v121_v40 = vsel %vm56_vm0, %v101_v33, -inf  ;;  %s908_s8 = sld [smem:[#allocation2 + $0x5]] }
  0x21   :  { %v122_v42 = vrot.slane %v121_v40, 4  ;;  %v69_v43 = vrot.slane %v68_v31, 1  ;;  %v83_v44 = vrot.slane %v82_v35, 1  ;;  %v102_v45 = vld.sshfl [vmem:[#allocation1 + $0x18] sm:$0xff pattern:$0x75316420]  ;;  %v217_v27 = vstv %s216_s26 }
  0x22   :  { %v63_v46 = vadd.f32 %v62_v37, %v61_v28  ;;  %v77_v47 = vadd.f32 %v76_v38, %v75_v29  ;;  %v109_v48 = vmax.f32 %v107_v34, %v108_v39  ;;  %v115_v49 = vrot.slane %v114_v36, 4  ;;  %s913_s9 = sld [smem:[#allocation2 + $0xe]] }
  0x23   :  { %v123_v50 = vmax.f32 %v121_v40, %v122_v42  ;;  %v70_v51 = vadd.f32 %v69_v43, %v68_v31  ;;  %v84_v52 = vadd.f32 %v83_v44, %v82_v35  ;;  %v128_v53 = vsel %vm56_vm0, %v102_v45, -inf  ;;  %s933_s10 = sld [smem:[#allocation2 + $0x6]] }
  0x24   :  { %v794_v54 = vmul.f32 %v91_v41, %v63_v46  ;;  %v796_v55 = vmul.f32 %v91_v41, %v77_v47  ;;  %v110_v56 = vrot.slane %v109_v48, 2  ;;  %v116_v57 = vmax.f32 %v114_v36, %v115_v49  ;;  %s943_s11 = sld [smem:[#allocation2 + $0xf]] }
  0x25   :  { %v124_v58 = vrot.slane %v123_v50, 2  ;;  %v129_v59 = vrot.slane %v128_v53, 4  ;;  %v801_v4 = vmul.f32 %v91_v41, %v70_v51  ;;  %v803_v5 = vmul.f32 %v91_v41, %v84_v52  ;;  %s957_s12 = sld [smem:[#allocation2 + $0x10]] }
  0x26   :  { %v191_v60 = vsel %vm190_vm2, %v796_v55, %v794_v54  ;;  %v111_v61 = vmax.f32 %v109_v48, %v110_v56  ;;  %v117_v62 = vrot.slane %v116_v57, 2  ;;  %v826_v24 = vand.u32 127, %v135_v21  ;;  %s976_s13 = sld [smem:[#allocation2 + $0x7]] }
  0x27   :  { %195 = vrot.lane.b32.xlu0 %v191_v60, %s745_s0  ;;  %v125_v63 = vmax.f32 %v123_v50, %v124_v58  ;;  %v130_v2 = vmax.f32 %v128_v53, %v129_v59  ;;  %242 = vrot.lane.b32.xlu2 %v191_v60, %s746_s1  ;;  %v192_v13 = vsel %vm190_vm2, %v803_v5, %v801_v4  ;;  %v221_v30 = vstv %s623_s27  ;;  %s1028_s14 = sld [smem:[#allocation2 + $0x8]] }
  0x28   :  { %v112_v3 = vrot.slane %v111_v61, 1  ;;  %v118_v6 = vmax.f32 %v116_v57, %v117_v62  ;;  %vm199_vm3 = vcmp.lt.s32.totalorder %v826_v24, 17  ;;  %v848_v50 = vadd.s32 128, %v826_v24  ;;  %s1033_s15 = sld [smem:[#allocation2 + $0x11]] }
  0x29   :  { %v126_v7 = vrot.slane %v125_v63, 1  ;;  %v131_v8 = vrot.slane %v130_v2, 2  ;;  %v142_v52 = vand.u32 15, %v826_v24  ;;  %v171_v53 = vstv %s621_s28 }
  0x2a   :  { %v805_v9 = vmax.f32 %v111_v61, %v112_v3  ;;  %v119_v11 = vrot.slane %v118_v6, 1  ;;  %v177_v57 = vstv %s622_s29  ;;  %vm162_vm4 = vcmp.ge.s32.totalorder %v826_v24, 16 }
  0x2b   :  { %v807_v10 = vmax.f32 %v125_v63, %v126_v7  ;;  %v132_v12 = vmax.f32 %v130_v2, %v131_v8  ;;  %v149_v58 = vand.u32 15, %v848_v50  ;;  %v173_v59 = vmul.f32 %v171_v53, %v801_v4 }
  0x2c   :  { %v815_v16 = vmax.f32 %v118_v6, %v119_v11  ;;  %vm246_vm5 = vcmp.lt.s32.totalorder %v826_v24, 16  ;;  %vm862_vm6 = vcmp.ge.s32.totalorder %v142_v52, 1  ;;  %v260_v63 = vstv %s843_s30 }
  0x2d   :  { %v206_v14 = vsel %vm190_vm2, %v807_v10, %v805_v9  ;;  %v133_v15 = vrot.slane %v132_v12, 1  ;;  %v175_v3 = vmul.f32 %v171_v53, %v803_v5  ;;  %v180_v4 = vmul.f32 %v177_v57, %v807_v10  ;;  %vm890_vm7 = vmand %vm162_vm4, %vm862_vm6 }
  0x2e   :  { %210 = vrot.lane.b32.xlu1 %v206_v14, %s745_s0  ;;  %v179_v62 = vmul.f32 %v177_v57, %v815_v16  ;;  %v256_v8 = vstv %s845_s3  ;;  %v172_v10 = vmul.f32 %v171_v53, %v794_v54  ;;  %vm904_vm8 = vcmp.ge.s32.totalorder %v149_v58, 1 }
  0x2f   :  { %197 = vrot.lane.b32.xlu0 %v192_v13, %s745_s0  ;;  %v817_v17 = vmax.f32 %v132_v12, %v133_v15  ;;  %244 = vrot.lane.b32.xlu2 %v192_v13, %s746_s1  ;;  %v178_v12 = vmul.f32 %v177_v57, %v805_v9  ;;  %vm283_vm9 = vcmp.lt.s32.totalorder %v826_v24, 15  ;;  %vm929_vm10 = vcmp.lt.s32.totalorder %v142_v52, 15 }
  0x30   :  { %vm939_vm11 = vcmp.lt.s32.totalorder %v149_v58, 15  ;;  %vm322_vm12 = vcmp.lt.s32.totalorder %v826_v24, 1  ;;  %vm359_vm13 = vcmp.lt.s32.totalorder %v826_v24, 127  ;;  %vm302_vm14 = vmand %vm162_vm4, %vm929_vm10  ;;  %vm396_vm15 = vcmp.lt.s32.totalorder %v826_v24, 113 }
  0x31   :  { %v207_v18 = vsel %vm190_vm2, %v817_v17, %v815_v16  ;;  %vm435_vm1 = vcmp.lt.s32.totalorder %v826_v24, 112  ;;  %vm165_vm2 = vcmp.lt.s32.totalorder %v848_v50, 240 }
  0x36   :  { %212 = vrot.lane.b32.xlu1 %v207_v18, %s745_s0 }
  0x37   :  { %281 = vrot.lane.b32.xlu0 %v192_v13, %s747_s20  ;;  %279 = vrot.lane.b32.xlu2 %v191_v60, %s747_s20 }
  0x3e   :  { %251 = vrot.lane.b32.xlu1 %v207_v18, %s746_s1 }
  0x3f   :  { %249 = vrot.lane.b32.xlu0 %v206_v14, %s746_s1  ;;  %288 = vrot.lane.b32.xlu2 %v207_v18, %s747_s20 }
  0x46   :  { %286 = vrot.lane.b32.xlu1 %v206_v14, %s747_s20  ;;  %s607_s20 = sshll.u32 %s1101_s2, 4  ;;  %s608_s20 = int_to_ptr.hbm [resolvable:$true] %s607_s20 }
  0x47   :  { %318 = vrot.lane.b32.xlu0 %v191_v60, %s748_s21  ;;  %325 = vrot.lane.b32.xlu2 %v206_v14, %s748_s21 }
  0x4e   :  { %320 = vrot.lane.b32.xlu1 %v192_v13, %s748_s21 }
  0x4f   :  { %327 = vrot.lane.b32.xlu0 %v207_v18, %s748_s21  ;;  %357 = vrot.lane.b32.xlu2 %v192_v13, %s749_s22 }
  0x56   :  { %355 = vrot.lane.b32.xlu1 %v191_v60, %s749_s22 }
  0x57   :  { %362 = vrot.lane.b32.xlu0 %v206_v14, %s749_s22  ;;  %392 = vrot.lane.b32.xlu2 %v191_v60, %s750_s23 }
  0x5e   :  { %364 = vrot.lane.b32.xlu1 %v207_v18, %s749_s22 }
  0x5f   :  { %394 = vrot.lane.b32.xlu0 %v192_v13, %s750_s23  ;;  %401 = vrot.lane.b32.xlu2 %v207_v18, %s750_s23 }
  0x66   :  { %399 = vrot.lane.b32.xlu1 %v206_v14, %s750_s23 }
  0x67   :  { %431 = vrot.lane.b32.xlu0 %v191_v60, %s751_s24  ;;  %438 = vrot.lane.b32.xlu2 %v206_v14, %s751_s24 }
  0x6e   :  { %433 = vrot.lane.b32.xlu1 %v192_v13, %s751_s24 }
  0x6f   :  { %440 = vrot.lane.b32.xlu0 %v207_v18, %s751_s24  ;;  %470 = vrot.lane.b32.xlu2 %v192_v13, %s752_s25 }
  0x76   :  { %468 = vrot.lane.b32.xlu1 %v191_v60, %s752_s25  ;;  %v174_v60 = vmul.f32 %v171_v53, %v796_v55  ;;  %v181_v55 = vmul.f32 %v177_v57, %v817_v17  ;;  %v183_v17 = vadd.f32 %v179_v62, %v173_v59  ;;  %v369_v59 = vstv %s908_s8 }
  0x77   :  { %475 = vrot.lane.b32.xlu0 %v206_v14, %s752_s25 }
  0x78   :  { %v184_v9 = vadd.f32 %v180_v4, %v174_v60 }
  0x7e   :  { %477 = vrot.lane.b32.xlu1 %v207_v18, %s752_s25 }
  0x81   :  { %v822_v19 = vpop.permute.xlu2 %242 }
  0x89   :  { %v824_v22 = vpop.permute.xlu2 %244 }
  0x8a   :  { %v248_v11 = vsel %vm246_vm5, %v824_v22, %v822_v19  ;;  %v247_v13 = vsel %vm246_vm5, %v822_v19, %v824_v22 }
  0x8b   :  { %v257_v19 = vmul.f32 %v256_v8, %v248_v11  ;;  %v258_v22 = vmul.f32 %v256_v8, %v247_v13 }
  0x91   :  { %v829_v26 = vpop.permute.xlu2 %279 }
  0x99   :  { %v196_v20 = vpop.permute.xlu0 %195  ;;  %v289_v42 = vpop.permute.xlu2 %288 }
  0xa0   :  { %v211_v23 = vpop.permute.xlu1 %210 }
  0xa1   :  { %v198_v25 = vpop.permute.xlu0 %197  ;;  %v835_v46 = vpop.permute.xlu2 %325 }
  0xa2   :  { %v200_v28 = vsel %vm199_vm3, %v196_v20, %v198_v25  ;;  %v201_v29 = vsel %vm199_vm3, %v198_v25, %v196_v20  ;;  %v185_v20 = vadd.f32 %v181_v55, %v175_v3  ;;  %v373_v3 = vstv %s913_s9 }
  0xa3   :  { %v218_v35 = vmul.f32 %v217_v27, %v201_v29  ;;  %v219_v36 = vmul.f32 %v217_v27, %v200_v28  ;;  %v182_v27 = vadd.f32 %v178_v12, %v172_v10 }
  0xa8   :  { %v213_v31 = vpop.permute.xlu1 %212 }
  0xa9   :  { %v214_v32 = vsel %vm199_vm3, %v211_v23, %v213_v31  ;;  %v215_v33 = vsel %vm199_vm3, %v213_v31, %v211_v23  ;;  %v831_v34 = vpop.permute.xlu0 %281  ;;  %v841_v49 = vpop.permute.xlu2 %357  ;;  %v297_v23 = vstv %s856_s4  ;;  %v293_v31 = vstv %s867_s5  ;;  %vm416_vm3 = vmand %vm165_vm2, %vm904_vm8 }
  0xaa   :  { %v222_v37 = vmul.f32 %v221_v30, %v215_v33  ;;  %v223_v38 = vmul.f32 %v221_v30, %v214_v32  ;;  %v285_v32 = vsel %vm283_vm9, %v831_v34, %v829_v26 }
  0xac   :  { %v224_v39 = vadd.f32 %v222_v37, %v218_v35  ;;  %v225_v40 = vadd.f32 %v223_v38, %v219_v36  ;;  %v284_v37 = vsel %vm283_vm9, %v829_v26, %v831_v34  ;;  %v336_v26 = vstv %s900_s7 }
  0xad   :  { %v295_v57 = vmul.f32 %v293_v31, %v284_v37 }
  0xae   :  { %v228_v21 = vsel %vm890_vm7, %v224_v39, 0.0  ;;  %v229_v28 = vsel %vm904_vm8, %v225_v40, 0.0 }
  0xaf   :  { %v232_v36 = vrot.slane %v228_v21, 1  ;;  %v233_v40 = vrot.slane %v229_v28, 1  ;;  %v239_v53 = vadd.f32 %v229_v28, %v183_v17  ;;  %v238_v62 = vadd.f32 %v228_v21, %v182_v27 }
  0xb0   :  { %v252_v41 = vpop.permute.xlu1 %251  ;;  %v406_v17 = vstv %s933_s10 }
  0xb1   :  { %v250_v43 = vpop.permute.xlu0 %249  ;;  %v877_v7 = vpop.permute.xlu2 %392  ;;  %v241_v4 = vadd.f32 %v233_v40, %v185_v20 }
  0xb2   :  { %v254_v2 = vsel %vm246_vm5, %v252_v41, %v250_v43  ;;  %v253_v6 = vsel %vm246_vm5, %v250_v43, %v252_v41  ;;  %v294_v43 = vmul.f32 %v293_v31, %v285_v32  ;;  %v449_v32 = vstv %s957_s12  ;;  %vm492_vm5 = vmand %vm165_vm2, %vm939_vm11 }
  0xb3   :  { %v261_v14 = vmul.f32 %v260_v63, %v254_v2  ;;  %v262_v18 = vmul.f32 %v260_v63, %v253_v6  ;;  %v240_v63 = vadd.f32 %v232_v36, %v184_v9  ;;  %v410_v9 = vstv %s943_s11 }
  0xb5   :  { %v263_v29 = vadd.f32 %v261_v14, %v257_v19  ;;  %v264_v33 = vadd.f32 %v262_v18, %v258_v22 }
  0xb7   :  { %v270_v58 = vrot.slane %v264_v33, 1  ;;  %v960_v6 = vadd.f32 %v264_v33, %v239_v53 }
  0xb8   :  { %v287_v44 = vpop.permute.xlu1 %286 }
  0xb9   :  { %v833_v45 = vpop.permute.xlu0 %318  ;;  %v291_v25 = vsel %vm283_vm9, %v289_v42, %v287_v44  ;;  %v290_v30 = vsel %vm283_vm9, %v287_v44, %v289_v42  ;;  %v332_v42 = vstv %s884_s6  ;;  %v949_v44 = vsel %vm162_vm4, %v263_v29, 0.0  ;;  %v402_v52 = vpop.permute.xlu2 %401 }
  0xba   :  { %v298_v39 = vmul.f32 %v297_v23, %v291_v25  ;;  %v299_v41 = vmul.f32 %v297_v23, %v290_v30  ;;  %v269_v55 = vrot.slane %v949_v44, 1  ;;  %v275_v11 = vadd.f32 %v949_v44, %v238_v62 }
  0xbb   :  { %v978_v12 = vadd.f32 %v270_v58, %v241_v4  ;;  %vm472_vm4 = vcmp.lt.s32.totalorder %v826_v24, 111 }
  0xbc   :  { %v300_v2 = vadd.f32 %v298_v39, %v294_v43  ;;  %v301_v8 = vadd.f32 %v299_v41, %v295_v57 }
  0xbe   :  { %v304_v18 = vsel %vm302_vm14, %v300_v2, 0.0  ;;  %v305_v20 = vsel %vm939_vm11, %v301_v8, 0.0 }
  0xbf   :  { %v308_v57 = vrot.slane %v304_v18, 1  ;;  %v309_v58 = vrot.slane %v305_v20, 1  ;;  %v314_v2 = vadd.f32 %v304_v18, %v275_v11 }
  0xc0   :  { %v837_v47 = vpop.permute.xlu1 %320 }
  0xc1   :  { %v839_v48 = vpop.permute.xlu0 %327  ;;  %v324_v13 = vsel %vm322_vm12, %v837_v47, %v833_v45  ;;  %v439_v31 = vpop.permute.xlu2 %438 }
  0xc2   :  { %v329_v5 = vsel %vm322_vm12, %v835_v46, %v839_v48  ;;  %v330_v10 = vsel %vm322_vm12, %v839_v48, %v835_v46  ;;  %v323_v46 = vsel %vm322_vm12, %v833_v45, %v837_v47  ;;  %v333_v23 = vmul.f32 %v332_v42, %v324_v13 }
  0xc3   :  { %v337_v19 = vmul.f32 %v336_v26, %v330_v10  ;;  %v338_v21 = vmul.f32 %v336_v26, %v329_v5 }
  0xc5   :  { %v339_v33 = vadd.f32 %v337_v19, %v333_v23 }
  0xc8   :  { %v850_v51 = vpop.permute.xlu1 %355 }
  0xc9   :  { %v853_v56 = vpop.permute.xlu0 %362  ;;  %v360_v22 = vsel %vm359_vm13, %v850_v51, %v841_v49  ;;  %v361_v45 = vsel %vm359_vm13, %v841_v49, %v850_v51 }
  0xca   :  { %v370_v30 = vmul.f32 %v369_v59, %v360_v22  ;;  %v371_v37 = vmul.f32 %v369_v59, %v361_v45  ;;  %v341_v59 = vsel %vm862_vm6, %v339_v33, 0.0  ;;  %v482_v45 = vstv %s1028_s14 }
  0xd0   :  { %v902_v15 = vpop.permute.xlu1 %364 }
  0xd1   :  { %v910_v54 = vpop.permute.xlu0 %394  ;;  %v366_v14 = vsel %vm359_vm13, %v853_v56, %v902_v15  ;;  %v367_v48 = vsel %vm359_vm13, %v902_v15, %v853_v56  ;;  %v334_v15 = vmul.f32 %v332_v42, %v323_v46  ;;  %v317_v46 = vadd.f32 %v309_v58, %v978_v12 }
  0xd2   :  { %v374_v47 = vmul.f32 %v373_v3, %v366_v14  ;;  %v375_v25 = vmul.f32 %v373_v3, %v367_v48  ;;  %v397_v27 = vsel %vm396_vm15, %v877_v7, %v910_v54  ;;  %v398_v28 = vsel %vm396_vm15, %v910_v54, %v877_v7 }
  0xd3   :  { %v340_v36 = vadd.f32 %v338_v21, %v334_v15  ;;  %v407_v41 = vmul.f32 %v406_v17, %v397_v27  ;;  %v408_v42 = vmul.f32 %v406_v17, %v398_v28  ;;  %v445_v7 = vstv %s976_s13 }
  0xd4   :  { %v376_v40 = vadd.f32 %v374_v47, %v370_v30  ;;  %v377_v54 = vadd.f32 %v375_v25, %v371_v37  ;;  %v315_v14 = vadd.f32 %v305_v20, %v960_v6  ;;  %v345_v17 = vrot.slane %v341_v59, 1  ;;  %v471_v6 = vpop.permute.xlu2 %470 }
  0xd5   :  { %v342_v62 = vsel %vm904_vm8, %v340_v36, 0.0  ;;  %v351_v48 = vadd.f32 %v341_v59, %v314_v2  ;;  %v486_v12 = vstv %s1033_s15 }
  0xd6   :  { %v379_v8 = vsel %vm939_vm11, %v377_v54, 0.0  ;;  %v346_v11 = vrot.slane %v342_v62, 1  ;;  %v352_v19 = vadd.f32 %v342_v62, %v315_v14 }
  0xd7   :  { %v383_v22 = vrot.slane %v379_v8, 1 }
  0xd8   :  { %v400_v34 = vpop.permute.xlu1 %399  ;;  %v389_v28 = vadd.f32 %v379_v8, %v352_v19 }
  0xd9   :  { %v954_v60 = vpop.permute.xlu0 %431  ;;  %v403_v49 = vsel %vm396_vm15, %v400_v34, %v402_v52  ;;  %v404_v51 = vsel %vm396_vm15, %v402_v52, %v400_v34  ;;  %v277_v34 = vadd.f32 %v269_v55, %v240_v63  ;;  %v378_v63 = vsel %vm929_vm10, %v376_v40, 0.0 }
  0xda   :  { %v411_v43 = vmul.f32 %v410_v9, %v403_v49  ;;  %v412_v44 = vmul.f32 %v410_v9, %v404_v51  ;;  %v382_v21 = vrot.slane %v378_v63, 1  ;;  %v388_v27 = vadd.f32 %v378_v63, %v351_v48 }
  0xdc   :  { %v413_v5 = vadd.f32 %v411_v43, %v407_v41  ;;  %v414_v10 = vadd.f32 %v412_v44, %v408_v42 }
  0xde   :  { %v417_v20 = vsel %vm862_vm6, %v413_v5, 0.0  ;;  %v418_v16 = vsel %vm416_vm3, %v414_v10, 0.0 }
  0xdf   :  { %v421_v51 = vrot.slane %v417_v20, 1  ;;  %v427_v54 = vadd.f32 %v417_v20, %v388_v27  ;;  %v428_v43 = vadd.f32 %v418_v16, %v389_v28 }
  0xe0   :  { %v434_v56 = vpop.permute.xlu1 %433 }
  0xe1   :  { %v441_v29 = vpop.permute.xlu0 %440  ;;  %v437_v26 = vsel %vm435_vm1, %v434_v56, %v954_v60  ;;  %v436_v3 = vsel %vm435_vm1, %v954_v60, %v434_v56  ;;  %v316_v60 = vadd.f32 %v308_v57, %v277_v34  ;;  %v354_v56 = vadd.f32 %v346_v11, %v317_v46 }
  0xe2   :  { %v443_v39 = vsel %vm435_vm1, %v441_v29, %v439_v31  ;;  %v442_v52 = vsel %vm435_vm1, %v439_v31, %v441_v29  ;;  %v447_v4 = vmul.f32 %v445_v7, %v437_v26  ;;  %v446_v9 = vmul.f32 %v445_v7, %v436_v3 }
  0xe3   :  { %v451_v53 = vmul.f32 %v449_v32, %v443_v39  ;;  %v450_v13 = vmul.f32 %v449_v32, %v442_v52  ;;  %v353_v47 = vadd.f32 %v345_v17, %v316_v60  ;;  %v391_v49 = vadd.f32 %v383_v22, %v354_v56 }
  0xe4   :  { %v422_v31 = vrot.slane %v418_v16, 1 }
  0xe5   :  { %v453_v18 = vadd.f32 %v451_v53, %v447_v4  ;;  %v452_v23 = vadd.f32 %v450_v13, %v446_v9  ;;  %v390_v61 = vadd.f32 %v382_v21, %v353_v47 }
  0xe6   :  { %v430_v26 = vadd.f32 %v422_v31, %v391_v49 }
  0xe7   :  { %v455_v15 = vsel %vm165_vm2, %v453_v18, 0.0  ;;  %v458_v33 = vrot.slane %v452_v23, 1  ;;  %v429_v44 = vadd.f32 %v421_v51, %v390_v61  ;;  %v464_v53 = vadd.f32 %v452_v23, %v427_v54 }
  0xe8   :  { %v469_v55 = vpop.permute.xlu1 %468  ;;  %v459_v36 = vrot.slane %v455_v15, 1  ;;  %v465_v57 = vadd.f32 %v455_v15, %v428_v43 }
  0xe9   :  { %v476_v25 = vpop.permute.xlu0 %475  ;;  %v473_v29 = vsel %vm472_vm4, %v469_v55, %v471_v6  ;;  %v474_v30 = vsel %vm472_vm4, %v471_v6, %v469_v55  ;;  %v466_v58 = vadd.f32 %v458_v33, %v429_v44 }
  0xea   :  { %v483_v40 = vmul.f32 %v482_v45, %v473_v29  ;;  %v484_v41 = vmul.f32 %v482_v45, %v474_v30  ;;  %v467_v24 = vadd.f32 %v459_v36, %v430_v26 }
  0xf0   :  { %v478_v32 = vpop.permute.xlu1 %477 }
  0xf1   :  { %v479_v37 = vsel %vm472_vm4, %v476_v25, %v478_v32  ;;  %v480_v39 = vsel %vm472_vm4, %v478_v32, %v476_v25 }
  0xf2   :  { %v487_v42 = vmul.f32 %v486_v12, %v479_v37  ;;  %v488_v7 = vmul.f32 %v486_v12, %v480_v39 }
  0xf4   :  { %v489_v34 = vadd.f32 %v487_v42, %v483_v40  ;;  %v490_v52 = vadd.f32 %v488_v7, %v484_v41 }
  0xf6   :  { %v493_v59 = vsel %vm929_vm10, %v489_v34, 0.0  ;;  %v494_v62 = vsel %vm492_vm5, %v490_v52, 0.0 }
  0xf7   :  { %v497_v2 = vrot.slane %v493_v59, 1  ;;  %v498_v63 = vrot.slane %v494_v62, 1  ;;  %v503_v3 = vadd.f32 %v493_v59, %v464_v53  ;;  %v504_v4 = vadd.f32 %v494_v62, %v465_v57 }
  0xf9   :  { %v505_v38 = vadd.f32 %v497_v2, %v466_v58  ;;  %v506_v55 = vadd.f32 %v498_v63, %v467_v24  ;;  %v638_v50 = vmul.f32 -1.442695, %v503_v3  ;;  %v639_v8 = vmul.f32 -1.442695, %v504_v4 }
  0xfb   :  { %658 = vpow2.f32 %v638_v50  ;;  %v640_v5 = vmul.f32 -1.442695, %v505_v38  ;;  %v641_v10 = vmul.f32 -1.442695, %v506_v55 }
  0xfc   :  { %660 = vpow2.f32 %v639_v8 }
  0xfd   :  { %662 = vpow2.f32 %v640_v5 }
  0xfe   :  { %664 = vpow2.f32 %v641_v10 }
 0x101   :  { %v659_v13 = vpop.eup %658 }
 0x102   :  { %v661_v14 = vpop.eup %660  ;;  %v519_v17 = vadd.f32 1.0, %v659_v13 }
 0x103   :  { %v663_v35 = vpop.eup %662  ;;  %v520_v11 = vadd.f32 1.0, %v661_v14 }
 0x104   :  { %v665_v18 = vpop.eup %664  ;;  %v521_v60 = vadd.f32 1.0, %v663_v35  ;;  %666 = vrcp.f32 %v519_v17  ;;  %v532_v48 = vand.u32 2147483647, %v519_v17  ;;  %v534_v19 = vand.u32 2147483648, %v519_v17 }
 0x105   :  { %v522_v46 = vadd.f32 1.0, %v665_v18  ;;  %668 = vrcp.f32 %v520_v11  ;;  %vm528_vm6 = vweird.f32 %v519_v17  ;;  %vm543_vm8 = vweird.f32 %v520_v11 }
 0x106   :  { %670 = vrcp.f32 %v521_v60  ;;  %vm1073_vm7 = vcmp.eq.f32.partialorder %v532_v48, 8.507059e+37  ;;  %v547_v47 = vand.u32 2147483647, %v520_v11  ;;  %v549_v56 = vand.u32 2147483648, %v520_v11 }
 0x107   :  { %672 = vrcp.f32 %v522_v46  ;;  %v535_v12 = vor.u32 1.1754944e-38, %v534_v19  ;;  %vm558_vm9 = vweird.f32 %v521_v60  ;;  %v562_v30 = vand.u32 2147483647, %v521_v60 }
 0x108   :  { %v564_v49 = vand.u32 2147483648, %v521_v60  ;;  %v579_v33 = vand.u32 2147483648, %v522_v46  ;;  %v577_v40 = vand.u32 2147483647, %v522_v46  ;;  %vm548_vm1 = vcmp.eq.f32.partialorder %v547_v47, 8.507059e+37 }
 0x109   :  { %v550_v42 = vor.u32 1.1754944e-38, %v549_v56  ;;  %vm573_vm3 = vweird.f32 %v522_v46  ;;  %vm563_vm5 = vcmp.eq.f32.partialorder %v562_v30, 8.507059e+37 }
 0x10a   :  { %v667_v9 = vpop.eup %666  ;;  %v565_v43 = vor.u32 1.1754944e-38, %v564_v49  ;;  %v580_v53 = vor.u32 1.1754944e-38, %v579_v33 }
 0x10b   :  { %v669_v21 = vpop.eup %668  ;;  %v524_v22 = vmul.f32 %v667_v9, %v519_v17  ;;  %vm529_vm10 = vweird.f32 %v667_v9 }
 0x10c   :  { %v671_v6 = vpop.eup %670  ;;  %v539_v16 = vmul.f32 %v669_v21, %v520_v11  ;;  %vm544_vm11 = vweird.f32 %v669_v21  ;;  %vm1078_vm13 = vmor %vm528_vm6, %vm529_vm10  ;;  %vm578_vm6 = vcmp.eq.f32.partialorder %v577_v40, 8.507059e+37 }
 0x10d   :  { %v673_v23 = vpop.eup %672  ;;  %v525_v45 = vsub.f32 1.0, %v524_v22  ;;  %v554_v15 = vmul.f32 %v671_v6, %v521_v60  ;;  %vm559_vm12 = vweird.f32 %v671_v6  ;;  %vm545_vm15 = vmor %vm543_vm8, %vm544_vm11 }
 0x10e   :  { %v540_v25 = vsub.f32 1.0, %v539_v16  ;;  %v569_v27 = vmul.f32 %v673_v23, %v522_v46  ;;  %vm574_vm14 = vweird.f32 %v673_v23  ;;  %vm560_vm2 = vmor %vm558_vm9, %vm559_vm12 }
 0x10f   :  { %v526_v28 = vmul.f32 %v667_v9, %v525_v45  ;;  %v555_v29 = vsub.f32 1.0, %v554_v15  ;;  %vm575_vm4 = vmor %vm573_vm3, %vm574_vm14 }
 0x110   :  { %v541_v61 = vmul.f32 %v669_v21, %v540_v25  ;;  %v570_v51 = vsub.f32 1.0, %v569_v27 }
 0x111   :  { %v527_v31 = vadd.f32 %v667_v9, %v526_v28  ;;  %v556_v32 = vmul.f32 %v671_v6, %v555_v29 }
 0x112   :  { %v542_v37 = vadd.f32 %v669_v21, %v541_v61  ;;  %v571_v39 = vmul.f32 %v673_v23, %v570_v51 }
 0x113   :  { %v531_v41 = vsel %vm1078_vm13, %v667_v9, %v527_v31  ;;  %v557_v7 = vadd.f32 %v671_v6, %v556_v32 }
 0x114   :  { %v546_v54 = vsel %vm545_vm15, %v669_v21, %v542_v37  ;;  %v572_v44 = vadd.f32 %v673_v23, %v571_v39  ;;  %v536_v26 = vsel %vm1073_vm7, %v535_v12, %v531_v41 }
 0x115   :  { %v551_v34 = vsel %vm548_vm1, %v550_v42, %v546_v54  ;;  %v561_v52 = vsel %vm560_vm2, %v671_v6, %v557_v7  ;;  %v583_v62 = vperm.slane %v536_v26, 0 }
 0x116   :  { %v576_v57 = vsel %vm575_vm4, %v673_v23, %v572_v44  ;;  %v584_v58 = vperm.slane %v551_v34, 0  ;;  %v566_v24 = vsel %vm563_vm5, %v565_v43, %v561_v52 }
 0x117   :  { %v581_v59 = vsel %vm578_vm6, %v580_v53, %v576_v57  ;;  %v585_v3 = vperm.slane %v566_v24, 0 }
 0x118   :  { %v586_v2 = vperm.slane %v581_v59, 0  ;;  %v591_v63 = vrot.slane %v584_v58, 4 }
 0x11a   :  { %v592_v4 = vrot.slane %v586_v2, 4  ;;  %v593_v38 = vsel %vm56_vm0, %v583_v62, %v591_v63 }
 0x11b   :  { %v597_v55 = vmul.f32 %v593_v38, %v778_v0 }
 0x11c   :  { %v594_v50 = vsel %vm56_vm0, %v585_v3, %v592_v4 }
 0x11d   :  { %v598_v8 = vmul.f32 %v594_v50, %v780_v1  ;;  %599 = vst [vmem:[#allocation7] sm:$0xff] %v597_v55 }
 0x11f   :  { %600 = vst [vmem:[#allocation7 + $0x8] sm:$0xff] %v598_v8 }
 0x120   :  { %613 = dma.vmem_to_hbm [thread:$0]  %s606_s17, 256, %s608_s20, [#allocation4], %s742_s18, %s742_s18, %s743_s19  }
 0x121   :  { %738 = dma.done.wait [#allocation4], 256  }
 0x122   :  { %739 = vsyncadd [#allocation4], 4294967040 }
 0x123   :  { %618 = vsyncpa [#allocation3], 1 }
 0x124   :  { %619 = vsyncpa [#allocation4], 1 }
 0x125   :  { %620 = vsyncpa [#allocation5], 1 }

</bundles_post_ra>
